<compile_context>
chip_gen: v5e
topology: v5e:2x2
jax: 0.10.0
libtpu: 0.0.40
codegen_flags: <defaults>
</compile_context>

<pallas_src>
import functools
from math import sqrt

import jax
import jax.numpy as jnp
from jax.experimental import pallas as pl
from jax.experimental.pallas import tpu as pltpu


def _round_up(n, m):
    return ((n + m - 1) // m) * m


def _mlp_fused_kernel(x_ref, *refs, num_layers):
    """Whole-MLP forward on one batch tile; intermediates live in vregs/VMEM.

    refs = (w0, b0, w1, b1, ..., w_{L-1}, b_{L-1}, o_ref)
      x_ref : (TILE_M, d0)           activations at their HBM dtype
      w_i   : (d_i, d_{i+1})         transposed weights, compute dtype
      b_i   : (1, d_{i+1})           float32 bias
      o_ref : (TILE_M, d_L)          float32 output
    """
    o_ref = refs[-1]
    layer_refs = refs[:-1]

    h = x_ref[...]
    for i in range(num_layers):          # static Python unroll (traced once)
        w_ref = layer_refs[2 * i]
        b_ref = layer_refs[2 * i + 1]
        # MXU matmul in the weights' dtype (f32 or bf16), f32 accumulation.
        y = jnp.dot(h.astype(w_ref.dtype), w_ref[...],
                    preferred_element_type=jnp.float32)
        # Bias add + ReLU stay in f32.
        y = y + b_ref[...]
        if i < num_layers - 1:
            y = jnp.maximum(y, 0.0)
        h = y
    o_ref[...] = h.astype(o_ref.dtype)


def prepare_params(params, compute_dtype=jnp.bfloat16):
    """One-time prep (hoisted out of the forward path).

    params: list of (w_t, b) with w_t (n_in, n_out), b (n_out,)
    Returns list of (w_t cast to compute_dtype, bias as (1, n_out) float32).
    bf16 inputs are fine on all of v5e/v6e/v7x (MXU supports bf16 everywhere;
    everything after the matmul stays f32 here).
    """
    prepped = []
    for w_t, b in params:
        prepped.append((jnp.asarray(w_t, compute_dtype),
                        jnp.asarray(b, jnp.float32).reshape(1, -1)))
    return prepped


def net_forward_pallas(prepped_params, x, *, tile_m=1024):
    """Forward pass of Net as one fused pallas_call.

    prepped_params: output of prepare_params (already transposed/cast/padded).
    x: (batch, n_in), f32 or bf16 -- streamed at its own dtype, cast to the
       weight dtype inside the kernel.
    """
    num_layers = len(prepped_params)
    batch, n_in = x.shape
    assert prepped_params[0][0].shape[0] == n_in
    dims = [n_in] + [w.shape[1] for w, _ in prepped_params]

    # Batch tile: dtype-aware sublane rounding (8 rows for f32 x, 16 for bf16),
    # capped at ~half the batch so grid_m >= 2 whenever the batch allows
    # (keeps both v7x TensorCores busy under dimension_semantics=("parallel",)).
    sub = max(8, 32 // x.dtype.itemsize)
    tile_m = _round_up(max(1, min(tile_m, batch)), sub)
    if batch >= 2 * sub:
        tile_m = min(tile_m, _round_up(pl.cdiv(batch, 2), sub))
    batch_pad = _round_up(batch, tile_m)
    grid_m = batch_pad // tile_m

    x_in = x if batch_pad == batch else jnp.pad(x, ((0, batch_pad - batch), (0, 0)))

    operands = [x_in]
    in_specs = [pl.BlockSpec((tile_m, dims[0]), lambda i: (i, 0))]
    for w_t, b in prepped_params:
        operands += [w_t, b]
        # Full-array blocks, constant block index -> DMA'd exactly once.
        in_specs += [
            pl.BlockSpec(w_t.shape, lambda i: (0, 0)),
            pl.BlockSpec(b.shape, lambda i: (0, 0)),
        ]

    # Advisory cost estimate so XLA can schedule neighbours around the call.
    flops = 2 * batch_pad * sum(dims[i] * dims[i + 1] for i in range(num_layers))
    param_bytes = sum(w.size * w.dtype.itemsize + b.size * 4
                      for w, b in prepped_params)
    bytes_accessed = (batch_pad * dims[0] * x.dtype.itemsize
                      + param_bytes
                      + batch_pad * dims[-1] * 4)

    # Rough per-step VMEM need (double-buffered x/out blocks + params +
    # intermediate activations), floored at 32 MiB so this only ever raises
    # the compiler budget (relevant for v5e's 16 MiB default at huge tiles).
    vmem_need = (2 * tile_m * dims[0] * x.dtype.itemsize
                 + 2 * tile_m * dims[-1] * 4
                 + param_bytes
                 + 4 * tile_m * max(dims) * 4)
    vmem_limit = int(min(max(32 * 1024 * 1024, 2 * vmem_need), 64 * 1024 * 1024))

    kernel = functools.partial(_mlp_fused_kernel, num_layers=num_layers)
    out = pl.pallas_call(
        kernel,
        out_shape=jax.ShapeDtypeStruct((batch_pad, dims[-1]), jnp.float32),
        grid=(grid_m,),
        in_specs=in_specs,
        out_specs=pl.BlockSpec((tile_m, dims[-1]), lambda i: (i, 0)),
        compiler_params=pltpu.CompilerParams(
            dimension_semantics=("parallel",),
            vmem_limit_bytes=vmem_limit),
        cost_estimate=pl.CostEstimate(
            flops=flops, transcendentals=0, bytes_accessed=bytes_accessed),
    )(*operands)
    return out if batch_pad == batch else out[:batch]


def init_params(layers, key):
    """Replicates Net.__init__ weight init:
    weight_i ~ randn(n_out, n_in) * sqrt(a/n_in) with a=1 for i==0 else 2,
    bias_i = zeros(n_out). Weights returned already transposed to (n_in, n_out).
    """
    params = []
    for i in range(len(layers) - 1):
        n_in, n_out = layers[i], layers[i + 1]
        key, sub = jax.random.split(key)
        a = 1.0 if i == 0 else 2.0
        w = jax.random.normal(sub, (n_out, n_in), dtype=jnp.float32) * sqrt(a / n_in)
        b = jnp.zeros((n_out,), dtype=jnp.float32)
        params.append((w.T, b))
    return params


def _ref_forward(params, x):
    h = x
    for i, (w_t, b) in enumerate(params):
        h = h @ w_t + b
        if i < len(params) - 1:
            h = jnp.maximum(h, 0.0)
    return h


if __name__ == "__main__":
    # Net(layers=[32, 64, 64, 16]): input dim 32, two hidden layers of 64, output 16.
    # TODO(synk): Net.save/load/get_num_parameters and the DataLoader are host-side
    # utilities with no kernel equivalent; only forward() is implemented here.
    layers = [32, 64, 64, 16]
    batch = 2

    key = jax.random.PRNGKey(0)
    key, xkey = jax.random.split(key)
    params = init_params(layers, key)
    x = jax.random.normal(xkey, (batch, layers[0]), dtype=jnp.float32)

    ref = _ref_forward(params, x)

    # f32 MXU path (tight numeric check).
    p_f32 = prepare_params(params, compute_dtype=jnp.float32)
    out = net_forward_pallas(p_f32, x)
    jax.block_until_ready(out)
    assert out.shape == (batch, layers[-1])
    assert jnp.allclose(out, ref, atol=1e-5, rtol=1e-5)

    # Default bf16-input / f32-accumulate fast path (loose numeric check).
    p_bf16 = prepare_params(params)   # bf16 weights by default
    out_bf16 = net_forward_pallas(p_bf16, x)
    jax.block_until_ready(out_bf16)
    assert out_bf16.shape == (batch, layers[-1])
    assert jnp.allclose(out_bf16, ref, atol=1e-1, rtol=1e-1)

    # Larger, non-tile-multiple batch: exercises row padding and grid_m >= 2
    # (the v7x two-TensorCore path).
    key, xkey2 = jax.random.split(key)
    x_big = jax.random.normal(xkey2, (300, layers[0]), dtype=jnp.float32)
    out_big = net_forward_pallas(p_f32, x_big)
    jax.block_until_ready(out_big)
    assert out_big.shape == (300, layers[-1])
    assert jnp.allclose(out_big, _ref_forward(params, x_big), atol=1e-4, rtol=1e-4)

    print("KERNEL_OK")
</pallas_src>

<mosaic_0001>
module attributes {stable_mosaic.version = 11 : i64} {
  func.func @_mlp_fused_kernel(%arg0: i32, %arg1: memref<8x32xf32, #tpu.memory_space<vmem>>, %arg2: memref<32x64xf32, #tpu.memory_space<vmem>>, %arg3: memref<1x64xf32, #tpu.memory_space<vmem>>, %arg4: memref<64x64xf32, #tpu.memory_space<vmem>>, %arg5: memref<1x64xf32, #tpu.memory_space<vmem>>, %arg6: memref<64x16xf32, #tpu.memory_space<vmem>>, %arg7: memref<1x16xf32, #tpu.memory_space<vmem>>, %arg8: memref<8x16xf32, #tpu.memory_space<vmem>>) attributes {dimension_semantics = [#tpu.dimension_semantics<parallel>], iteration_bounds = array<i64: 1>, scalar_prefetch = 0 : i64, scratch_operands = 0 : i64, tpu.core_type = #tpu.core_type<tc>, window_params = [{transform_indices = @transform_0, window_bounds = array<i64: 8, 32>}, {pipeline_mode = #tpu.pipeline_mode<synchronous>, transform_indices = @transform_1, window_bounds = array<i64: 32, 64>}, {pipeline_mode = #tpu.pipeline_mode<synchronous>, transform_indices = @transform_2, window_bounds = array<i64: 1, 64>}, {pipeline_mode = #tpu.pipeline_mode<synchronous>, transform_indices = @transform_3, window_bounds = array<i64: 64, 64>}, {pipeline_mode = #tpu.pipeline_mode<synchronous>, transform_indices = @transform_4, window_bounds = array<i64: 1, 64>}, {pipeline_mode = #tpu.pipeline_mode<synchronous>, transform_indices = @transform_5, window_bounds = array<i64: 64, 16>}, {pipeline_mode = #tpu.pipeline_mode<synchronous>, transform_indices = @transform_6, window_bounds = array<i64: 1, 16>}, {transform_indices = @transform_7, window_bounds = array<i64: 8, 16>}]} {
    %c0 = arith.constant 0 : index
    %c0_0 = arith.constant 0 : index
    %0 = vector.load %arg1[%c0, %c0_0] : memref<8x32xf32, #tpu.memory_space<vmem>>, vector<8x32xf32>
    %c0_1 = arith.constant 0 : index
    %c0_2 = arith.constant 0 : index
    %1 = vector.load %arg2[%c0_1, %c0_2] : memref<32x64xf32, #tpu.memory_space<vmem>>, vector<32x64xf32>
    %cst = arith.constant dense<0.000000e+00> : vector<8x64xf32>
    %2 = tpu.matmul %0, %1, %cst {dimension_numbers = #tpu.dot_dimension_numbers<[1], [0], [0], [1], [0, 0, 1, 1], [], []>} : vector<8x32xf32>, vector<32x64xf32>, vector<8x64xf32> -> vector<8x64xf32>
    %c0_3 = arith.constant 0 : index
    %c0_4 = arith.constant 0 : index
    %3 = vector.load %arg3[%c0_3, %c0_4] : memref<1x64xf32, #tpu.memory_space<vmem>>, vector<1x64xf32>
    %4 = vector.broadcast %3 : vector<1x64xf32> to vector<8x64xf32>
    %5 = arith.addf %2, %4 : vector<8x64xf32>
    %cst_5 = arith.constant 0.000000e+00 : f32
    %6 = vector.broadcast %cst_5 : f32 to vector<8x64xf32>
    %7 = arith.maximumf %5, %6 : vector<8x64xf32>
    %c0_6 = arith.constant 0 : index
    %c0_7 = arith.constant 0 : index
    %8 = vector.load %arg4[%c0_6, %c0_7] : memref<64x64xf32, #tpu.memory_space<vmem>>, vector<64x64xf32>
    %cst_8 = arith.constant dense<0.000000e+00> : vector<8x64xf32>
    %9 = tpu.matmul %7, %8, %cst_8 {dimension_numbers = #tpu.dot_dimension_numbers<[1], [0], [0], [1], [0, 0, 1, 1], [], []>} : vector<8x64xf32>, vector<64x64xf32>, vector<8x64xf32> -> vector<8x64xf32>
    %c0_9 = arith.constant 0 : index
    %c0_10 = arith.constant 0 : index
    %10 = vector.load %arg5[%c0_9, %c0_10] : memref<1x64xf32, #tpu.memory_space<vmem>>, vector<1x64xf32>
    %11 = vector.broadcast %10 : vector<1x64xf32> to vector<8x64xf32>
    %12 = arith.addf %9, %11 : vector<8x64xf32>
    %cst_11 = arith.constant 0.000000e+00 : f32
    %13 = vector.broadcast %cst_11 : f32 to vector<8x64xf32>
    %14 = arith.maximumf %12, %13 : vector<8x64xf32>
    %c0_12 = arith.constant 0 : index
    %c0_13 = arith.constant 0 : index
    %15 = vector.load %arg6[%c0_12, %c0_13] : memref<64x16xf32, #tpu.memory_space<vmem>>, vector<64x16xf32>
    %cst_14 = arith.constant dense<0.000000e+00> : vector<8x16xf32>
    %16 = tpu.matmul %14, %15, %cst_14 {dimension_numbers = #tpu.dot_dimension_numbers<[1], [0], [0], [1], [0, 0, 1, 1], [], []>} : vector<8x64xf32>, vector<64x16xf32>, vector<8x16xf32> -> vector<8x16xf32>
    %c0_15 = arith.constant 0 : index
    %c0_16 = arith.constant 0 : index
    %17 = vector.load %arg7[%c0_15, %c0_16] : memref<1x16xf32, #tpu.memory_space<vmem>>, vector<1x16xf32>
    %18 = vector.broadcast %17 : vector<1x16xf32> to vector<8x16xf32>
    %19 = arith.addf %16, %18 : vector<8x16xf32>
    %c0_17 = arith.constant 0 : index
    %c0_18 = arith.constant 0 : index
    %20 = vector.load %arg8[%c0_17, %c0_18] : memref<8x16xf32, #tpu.memory_space<vmem>>, vector<8x16xf32>
    tpu.vector_store %arg8[%c0_17, %c0_18], %19 {strides = array<i32>} : memref<8x16xf32, #tpu.memory_space<vmem>>, vector<8x16xf32>,
    return
  }
  func.func @transform_0(%arg0: i32) -> (i32, i32) {
    %c0_i32 = arith.constant 0 : i32
    %c0_i32_0 = arith.constant 0 : i32
    return %arg0, %c0_i32 : i32, i32
  }
  func.func @transform_1(%arg0: i32) -> (i32, i32) {
    %c0_i32 = arith.constant 0 : i32
    %c0_i32_0 = arith.constant 0 : i32
    %c0_i32_1 = arith.constant 0 : i32
    return %c0_i32, %c0_i32_0 : i32, i32
  }
  func.func @transform_2(%arg0: i32) -> (i32, i32) {
    %c0_i32 = arith.constant 0 : i32
    %c0_i32_0 = arith.constant 0 : i32
    %c0_i32_1 = arith.constant 0 : i32
    return %c0_i32, %c0_i32_0 : i32, i32
  }
  func.func @transform_3(%arg0: i32) -> (i32, i32) {
    %c0_i32 = arith.constant 0 : i32
    %c0_i32_0 = arith.constant 0 : i32
    %c0_i32_1 = arith.constant 0 : i32
    return %c0_i32, %c0_i32_0 : i32, i32
  }
  func.func @transform_4(%arg0: i32) -> (i32, i32) {
    %c0_i32 = arith.constant 0 : i32
    %c0_i32_0 = arith.constant 0 : i32
    %c0_i32_1 = arith.constant 0 : i32
    return %c0_i32, %c0_i32_0 : i32, i32
  }
  func.func @transform_5(%arg0: i32) -> (i32, i32) {
    %c0_i32 = arith.constant 0 : i32
    %c0_i32_0 = arith.constant 0 : i32
    %c0_i32_1 = arith.constant 0 : i32
    return %c0_i32, %c0_i32_0 : i32, i32
  }
  func.func @transform_6(%arg0: i32) -> (i32, i32) {
    %c0_i32 = arith.constant 0 : i32
    %c0_i32_0 = arith.constant 0 : i32
    %c0_i32_1 = arith.constant 0 : i32
    return %c0_i32, %c0_i32_0 : i32, i32
  }
  func.func @transform_7(%arg0: i32) -> (i32, i32) {
    %c0_i32 = arith.constant 0 : i32
    %c0_i32_0 = arith.constant 0 : i32
    return %arg0, %c0_i32 : i32, i32
  }
}

</mosaic_0001>

<bundles_post_ra>
// kernel: tpu_custom_call.1
= control target key start
LH: loop header
LB: loop body
LE: loop exit
PB: predicated region body
PF: predicated region fallthrough
CT: control target
= control target key end

     0   :  { %12 = vsyncpa [#allocation3], 0  ;;  %s340_s0 = inlined_call_operand.vmem [shape: f32[8,32], index: 0, kind: input, shape index: {}]   ;;  %s341_s1 = inlined_call_operand.hbm [shape: f32[32,64], index: 1, kind: input, shape index: {}]   ;;  %s342_s2 = inlined_call_operand.vmem [shape: f32[1,64], index: 2, kind: input, shape index: {}]   ;;  %s343_s3 = inlined_call_operand.vmem [shape: f32[64,64], index: 3, kind: input, shape index: {}]   ;;  %s344_s4 = inlined_call_operand.vmem [shape: f32[1,64], index: 4, kind: input, shape index: {}]   ;;  %s345_s5 = inlined_call_operand.vmem [shape: f32[64,16], index: 5, kind: input, shape index: {}]   ;;  %s346_s6 = inlined_call_operand.vmem [shape: f32[1,16], index: 6, kind: input, shape index: {}]   ;;  %s347_s7 = inlined_call_operand.hbm [shape: f32[8,16], index: 7, kind: output, shape index: {}]  }
   0x1   :  { %13 = vsyncpa [#allocation4], 0  ;;  %s20_s26 = sshll.u32 %s341_s1, 4  ;;  %s230_s27 = smov [#allocation2]   ;;  %s21_s26 = int_to_ptr.hbm [resolvable:$true] %s20_s26 }
   0x2   :  { %s22_s28 = sshll.u32 %s230_s27, 4  ;;  %s231_s29 = smov 128   ;;  %s23_s28 = int_to_ptr.vmem [resolvable:$true] %s22_s28 }
   0x3   :  { %s232_s30 = smov 8  }
   0x4   :  { %28 = dma.hbm_to_vmem [thread:$0]  %s21_s26, 512, %s23_s28, [#allocation3], %s231_s29, %s231_s29, %s232_s30  }
   0x5   :  { %226 = dma.done.wait [#allocation3], 512  }
   0x6   :  { %227 = vsyncadd [#allocation3], 4294966784  ;;  %v47_v0 = vld [vmem:[#allocation2 + $0x18] sm:$0xff]  ;;  %v46_v1 = vld [vmem:[#allocation2 + $0x10] sm:$0xff]  ;;  %vm52_vm0 = vcmask 261120   ;;  %vm89_vm1 = vcmask 523264  }
   0x7   :  { %68 = vmatpush.msra.mxu0 %v47_v0  ;;  %v84_v2 = vld [vmem:[%s343_s3 + $0x38] sm:$0xff]  ;;  %v45_v3 = vld [vmem:[#allocation2 + $0x8] sm:$0xff]  ;;  %v83_v4 = vld [vmem:[%s343_s3 + $0x30] sm:$0xff]  ;;  %s233_s20 = smov [#allocation5]   ;;  %s158_s23 = sshll.u32 %s347_s7, 4  ;;  %vm149_vm2 = vcmask 130048   ;;  %s159_s23 = int_to_ptr.hbm [resolvable:$true] %s158_s23 }
   0x8   :  { %101 = vmatpush.msra.mxu1 %v84_v2  ;;  %v82_v5 = vld [vmem:[%s343_s3 + $0x28] sm:$0xff]  ;;  %v44_v6 = vld [vmem:[#allocation2] sm:$0xff]  ;;  %v80_v9 = vld [vmem:[%s343_s3 + $0x18] sm:$0xff] }
   0x9   :  { %69 = vmatpush.msra.mxu0 %v46_v1  ;;  %v43_v7 = vld [vmem:[%s340_s0] sm:$0xff]  ;;  %v79_v10 = vld [vmem:[%s343_s3 + $0x10] sm:$0xff]  ;;  %v78_v11 = vld [vmem:[%s343_s3 + $0x8] sm:$0xff]  ;;  %s156_s0 = sshll.u32 %s233_s20, 4  ;;  %s157_s0 = int_to_ptr.vmem [resolvable:$true] %s156_s0 }
   0xa   :  { %102 = vmatpush.msra.mxu1 %v83_v4  ;;  %v81_v8 = vld [vmem:[%s343_s3 + $0x20] sm:$0xff]  ;;  %v121_v13 = vld [vmem:[%s345_s5 + $0x38] sm:$0xff]  ;;  %v120_v14 = vld [vmem:[%s345_s5 + $0x30] sm:$0xff] }
   0xb   :  { %70 = vmatpush.msra.mxu0 %v45_v3  ;;  %v77_v12 = vld [vmem:[%s343_s3] sm:$0xff]  ;;  %137 = vmatpush.msra.mxu2 %v121_v13  ;;  %v119_v15 = vld [vmem:[%s345_s5 + $0x28] sm:$0xff]  ;;  %v117_v17 = vld [vmem:[%s345_s5 + $0x18] sm:$0xff] }
   0xc   :  { %103 = vmatpush.msra.mxu1 %v82_v5  ;;  %v118_v16 = vld [vmem:[%s345_s5 + $0x20] sm:$0xff]  ;;  %v116_v22 = vld [vmem:[%s345_s5 + $0x10] sm:$0xff]  ;;  %v115_v23 = vld [vmem:[%s345_s5 + $0x8] sm:$0xff] }
   0xd   :  { %71 = vmatpush.msra.mxu0 %v44_v6  ;;  %138 = vmatpush.msra.mxu2 %v120_v14  ;;  %v175_v18 = vld [vmem:[%s342_s2] ss:$0 sm:$0xff] }
   0xe   :  { %168 = vmatmul.msk.f32.vlgmr.msra.gmra.mxu0 %vm52_vm0, %v43_v7  ;;  %104 = vmatpush.msra.mxu1 %v81_v8  ;;  %v114_v24 = vld [vmem:[%s345_s5] sm:$0xff] }
   0xf   :  { %139 = vmatpush.msra.mxu2 %v119_v15  ;;  %v176_v25 = vld [vmem:[%s344_s4] ss:$0 sm:$0xff] }
  0x10   :  { %105 = vmatpush.msra.mxu1 %v80_v9  ;;  %v177_v29 = vld [vmem:[%s346_s6] ss:$0 sm:$0xff] }
  0x11   :  { %140 = vmatpush.msra.mxu2 %v118_v16 }
  0x12   :  { %106 = vmatpush.msra.mxu1 %v79_v10 }
  0x13   :  { %141 = vmatpush.msra.mxu2 %v117_v17 }
  0x14   :  { %107 = vmatpush.msra.mxu1 %v78_v11 }
  0x15   :  { %142 = vmatpush.msra.mxu2 %v116_v22 }
  0x16   :  { %108 = vmatpush.msra.mxu1 %v77_v12 }
  0x17   :  { %143 = vmatpush.msra.mxu2 %v115_v23 }
  0x19   :  { %144 = vmatpush.msra.mxu2 %v114_v24 }
  0x8b   :  { %v73_v19 = vpop.f32.mrf.mxu0 }
  0x8c   :  { %v74_v20 = vadd.f32 %v175_v18, %v73_v19 }
  0x8e   :  { %v76_v21 = vmax.f32 %v74_v20, 0.0 }
  0x90   :  { %169 = vmatmul.msk.f32.vlgmr.msra.gmra.mxu1 %vm89_vm1, %v76_v21 }
 0x10d   :  { %v110_v26 = vpop.f32.mrf.mxu1 }
 0x10e   :  { %v111_v27 = vadd.f32 %v176_v25, %v110_v26 }
 0x110   :  { %v113_v28 = vmax.f32 %v111_v27, 0.0 }
 0x112   :  { %170 = vmatmul.msk.f32.vlgmr.msra.gmra.mxu2 %vm89_vm1, %v113_v28 }
 0x195   :  { %v146_v30 = vpop.f32.mrf.mxu2 }
 0x196   :  { %v147_v31 = vadd.f32 %v177_v29, %v146_v30 }
 0x198   :  { %150 = vst.msk [vmem:[#allocation5] sm:$0xff] %vm149_vm2, %v147_v31 }
 0x199   :  { %161 = dma.vmem_to_hbm [thread:$0]  %s157_s0, 128, %s159_s23, [#allocation4]  }
 0x19a   :  { %228 = dma.done.wait [#allocation4], 128  }
 0x19b   :  { %229 = vsyncadd [#allocation4], 4294967168 }
 0x19c   :  { %166 = vsyncpa [#allocation3], 1 }
 0x19d   :  { %167 = vsyncpa [#allocation4], 1 }

</bundles_post_ra>
